<compile_context>
chip_gen: v7x
topology: tpu7x:2x2x1
jax: 0.10.0
libtpu: 0.0.40
codegen_flags: <defaults>
</compile_context>

<pallas_src>
import functools

import jax
import jax.numpy as jnp
from jax import lax
from jax.experimental import pallas as pl
from jax.experimental.pallas import tpu as pltpu


def _round_up(x, m):
    return ((x + m - 1) // m) * m


def _patch_embed_kernel(x_ref, w_ref, b_ref, o_ref):
    # x_ref: (tm, Kp) bf16 patch rows, w_ref: (Kp, Np) bf16, b_ref: (1, Np) f32,
    # o_ref: (tm, Np) out_dtype.  MXU matmul with f32 accumulation; bias add in
    # f32; single cast on the store.
    acc = jnp.dot(x_ref[...], w_ref[...], preferred_element_type=jnp.float32)
    o_ref[...] = (acc + b_ref[...]).astype(o_ref.dtype)


def _choose_tm(M, Kp, Np, out_bytes, tm_target):
    """Pick the row-tile size and padded row count.

    VMEM footprint per step: double-buffered x (tm*Kp bf16) and output
    (tm*Np*out_bytes), plus single-buffered resident weight (Kp*Np bf16) and
    bias (Np f32).  Budget is conservative enough for v7x (64 MiB physical,
    32 MiB scoped default).
    """
    budget = 24 << 20
    resident = Kp * Np * 2 + Np * 4
    per_row = 2 * (Kp * 2 + Np * out_bytes)
    tm_cap = max(16, ((budget - resident) // per_row) // 16 * 16)
    tm_target = max(16, min(tm_target, tm_cap))

    Mp = _round_up(M, 16)                 # bf16 sublane packing is 16 rows
    if Mp < 1024 and Mp <= tm_target:
        # Tiny problem: one grid step, no padding beyond the 16-row multiple.
        tm = Mp
    else:
        # At least 2 "parallel" steps so both v7x TensorCores get work.
        n_tiles = max(2, -(-Mp // tm_target))
        tm = _round_up(-(-Mp // n_tiles), 16)
        Mp = _round_up(Mp, tm)
    return tm, Mp


def patch_embed_matmul(patches, weight, bias, *, tm_target=1024,
                       out_dtype=jnp.bfloat16):
    """patches: (M, K), weight: (K, N), bias: (N,) -> (M, N) out_dtype.

    Pads M up to the row-tile size and K/N up to lane multiples (128) so the
    MXU sees full-width tiles and both the input loads and the output store
    are lane-dense; the padding is sliced off before returning.

    Note: bf16 inputs + bf16 output diverge from PyTorch's f32 Conv2d at the
    ~1e-3 level; pass out_dtype=jnp.float32 (and skip the bf16 input cast) if
    exact parity is required.
    """
    M, K = patches.shape
    Kw, N = weight.shape
    assert K == Kw

    # Lane-dense loads and stores: pad K and N to multiples of 128.
    # (128 is sufficient on v5e's 4x128x128 MXU; 768-style AST K is already a
    #  multiple of 256, so the 2x256x256 MXU on v6e/v7x is also fully fed.)
    Kp = _round_up(K, 128)
    Np = _round_up(N, 128)
    out_bytes = jnp.dtype(out_dtype).itemsize

    tm, Mp = _choose_tm(M, Kp, Np, out_bytes, tm_target)
    grid_m = Mp // tm

    # bf16 inputs for MXU throughput; accumulate in f32 inside the kernel.
    x_bf = patches.astype(jnp.bfloat16)
    if (Mp, Kp) != (M, K):
        x_bf = jnp.pad(x_bf, ((0, Mp - M), (0, Kp - K)))
    w_bf = weight.astype(jnp.bfloat16)
    if (Kp, Np) != (K, N):
        w_bf = jnp.pad(w_bf, ((0, Kp - K), (0, Np - N)))
    b_f32 = bias.astype(jnp.float32).reshape(1, N)
    if Np != N:
        b_f32 = jnp.pad(b_f32, ((0, 0), (0, Np - N)))

    # Actual VMEM footprint of one pipeline configuration (weight/bias
    # single-buffered, x/out double-buffered), with headroom for compiler
    # internal scratch.  Never below the 32 MiB scoped default (safe on v7x).
    vmem_bytes = (Kp * Np * 2 + Np * 4
                  + 2 * tm * Kp * 2
                  + 2 * tm * Np * out_bytes)
    vmem_limit = max(vmem_bytes + (4 << 20), 32 << 20)

    cost = pl.CostEstimate(
        flops=2 * Mp * Kp * Np,
        transcendentals=0,
        # With input fusion active the x read from HBM is the producer's f32
        # tensor (4 B/elem); weight is bf16, bias f32, output out_dtype.
        # The post-kernel slice (when padded) lives outside this custom call.
        bytes_accessed=4 * M * K + 2 * Kp * Np + 4 * Np + out_bytes * Mp * Np,
    )

    out = pl.pallas_call(
        _patch_embed_kernel,
        out_shape=jax.ShapeDtypeStruct((Mp, Np), out_dtype),
        grid_spec=pltpu.PrefetchScalarGridSpec(
            num_scalar_prefetch=0,
            grid=(grid_m,),
            in_specs=[
                pl.BlockSpec((tm, Kp), lambda i: (i, 0)),
                # Weight and bias are grid-invariant (constant index_map):
                # single-buffer them so the freed VMEM can go to bigger row
                # tiles instead.
                pl.BlockSpec((Kp, Np), lambda i: (0, 0),
                             pipeline_mode=pl.Buffered(1)),
                pl.BlockSpec((1, Np), lambda i: (0, 0),
                             pipeline_mode=pl.Buffered(1)),
            ],
            out_specs=pl.BlockSpec((tm, Np), lambda i: (i, 0)),
        ),
        compiler_params=pltpu.CompilerParams(
            dimension_semantics=("parallel",),
            # Let XLA fuse the patch-extraction transpose / pad / cast into
            # the kernel's input DMA instead of a second HBM round-trip.
            # TODO(synk): verify with xprof that the fused 6-D transpose DMA
            # beats a materialized patch matrix; if not, permute w_mat's K
            # ordering to match the cheapest patch layout or go pl.ANY +
            # manual strided DMA of row-of-patch strips.
            allow_input_fusion=[True, False, False],
            vmem_limit_bytes=vmem_limit,
        ),
        cost_estimate=cost,
    )(x_bf, w_bf, b_f32)

    return out[:M, :N]


def patch_embed_forward(x, weight, bias, patch_size, *, out_dtype=jnp.bfloat16):
    """x: (B, C, H, W) NCHW, weight: (embed_dim, C, ph, pw), bias: (embed_dim,).
    Returns (B, num_patches, embed_dim) matching PatchEmbed.forward."""
    B, C, H, W = x.shape
    ph, pw = patch_size
    Hp, Wp = H // ph, W // pw
    num_patches = Hp * Wp
    embed_dim = weight.shape[0]

    # Extract non-overlapping patches (layout plumbing, not compute).
    # (B, C, Hp, ph, Wp, pw) -> (B, Hp, Wp, C, ph, pw) -> (B*num_patches, C*ph*pw)
    # Row ordering matches torch's flatten(2).transpose(1,2).
    xp = x.reshape(B, C, Hp, ph, Wp, pw)
    xp = jnp.transpose(xp, (0, 2, 4, 1, 3, 5))
    patches = xp.reshape(B * num_patches, C * ph * pw)

    # Conv weight -> linear weight: (embed_dim, C, ph, pw) -> (C*ph*pw, embed_dim)
    w_mat = weight.reshape(embed_dim, C * ph * pw).T

    out = patch_embed_matmul(patches, w_mat, bias, out_dtype=out_dtype)
    return out.reshape(B, num_patches, embed_dim)


if __name__ == "__main__":
    # Small, consistent shapes: img_size=16, patch_size=4, in_chans=4, embed_dim=32
    B, C, H, W = 2, 4, 16, 16
    ph = pw = 4
    embed_dim = 32

    key = jax.random.PRNGKey(0)
    kx, kw, kb = jax.random.split(key, 3)
    x = jax.random.normal(kx, (B, C, H, W), dtype=jnp.float32)
    weight = jax.random.normal(kw, (embed_dim, C, ph, pw), dtype=jnp.float32) * 0.02
    bias = jax.random.normal(kb, (embed_dim,), dtype=jnp.float32) * 0.02

    fwd = jax.jit(functools.partial(patch_embed_forward, patch_size=(ph, pw)))
    out = fwd(x, weight, bias)
    out = jax.block_until_ready(out)
    assert out.shape == (B, (H // ph) * (W // pw), embed_dim)
    assert out.dtype == jnp.bfloat16

    # Reference check against XLA conv (same semantics as nn.Conv2d stride=kernel).
    ref = lax.conv_general_dilated(
        x, weight, window_strides=(ph, pw), padding="VALID",
        dimension_numbers=("NCHW", "OIHW", "NCHW"),
    ) + bias.reshape(1, embed_dim, 1, 1)
    ref = ref.reshape(B, embed_dim, -1).transpose(0, 2, 1)
    # bf16 inputs + bf16 output with f32 accumulation -> relaxed tolerance
    # vs. the pure-f32 reference.
    assert jnp.allclose(out.astype(jnp.float32), ref, atol=1e-2, rtol=1e-2)

    print("KERNEL_OK")
</pallas_src>

<mosaic_0001>
module attributes {stable_mosaic.version = 11 : i64} {
  func.func @_patch_embed_kernel(%arg0: i32, %arg1: memref<32x128xbf16, #tpu.memory_space<vmem>>, %arg2: memref<128x128xbf16, #tpu.memory_space<vmem>>, %arg3: memref<1x128xf32, #tpu.memory_space<vmem>>, %arg4: memref<32x128xbf16, #tpu.memory_space<vmem>>) attributes {dimension_semantics = [#tpu.dimension_semantics<parallel>], iteration_bounds = array<i64: 1>, scalar_prefetch = 0 : i64, scratch_operands = 0 : i64, tpu.core_type = #tpu.core_type<tc>, window_params = [{transform_indices = @transform_0, window_bounds = array<i64: 32, 128>}, {pipeline_mode = #tpu.pipeline_mode<synchronous>, transform_indices = @transform_1, window_bounds = array<i64: 128, 128>}, {pipeline_mode = #tpu.pipeline_mode<synchronous>, transform_indices = @transform_2, window_bounds = array<i64: 1, 128>}, {transform_indices = @transform_3, window_bounds = array<i64: 32, 128>}]} {
    %c0 = arith.constant 0 : index
    %c0_0 = arith.constant 0 : index
    %0 = vector.load %arg1[%c0, %c0_0] : memref<32x128xbf16, #tpu.memory_space<vmem>>, vector<32x128xbf16>
    %c0_1 = arith.constant 0 : index
    %c0_2 = arith.constant 0 : index
    %1 = vector.load %arg2[%c0_1, %c0_2] : memref<128x128xbf16, #tpu.memory_space<vmem>>, vector<128x128xbf16>
    %cst = arith.constant dense<0.000000e+00> : vector<32x128xf32>
    %2 = tpu.matmul %0, %1, %cst {dimension_numbers = #tpu.dot_dimension_numbers<[1], [0], [0], [1], [0, 0, 1, 1], [], []>} : vector<32x128xbf16>, vector<128x128xbf16>, vector<32x128xf32> -> vector<32x128xf32>
    %c0_3 = arith.constant 0 : index
    %c0_4 = arith.constant 0 : index
    %3 = vector.load %arg3[%c0_3, %c0_4] : memref<1x128xf32, #tpu.memory_space<vmem>>, vector<1x128xf32>
    %4 = vector.broadcast %3 : vector<1x128xf32> to vector<32x128xf32>
    %5 = arith.addf %2, %4 : vector<32x128xf32>
    %6 = arith.truncf %5 : vector<32x128xf32> to vector<32x128xbf16>
    %c0_5 = arith.constant 0 : index
    %c0_6 = arith.constant 0 : index
    %7 = vector.load %arg4[%c0_5, %c0_6] : memref<32x128xbf16, #tpu.memory_space<vmem>>, vector<32x128xbf16>
    tpu.vector_store %arg4[%c0_5, %c0_6], %6 {strides = array<i32>} : memref<32x128xbf16, #tpu.memory_space<vmem>>, vector<32x128xbf16>,
    return
  }
  func.func @transform_0(%arg0: i32) -> (i32, i32) {
    %c0_i32 = arith.constant 0 : i32
    %c0_i32_0 = arith.constant 0 : i32
    return %arg0, %c0_i32 : i32, i32
  }
  func.func @transform_1(%arg0: i32) -> (i32, i32) {
    %c0_i32 = arith.constant 0 : i32
    %c0_i32_0 = arith.constant 0 : i32
    %c0_i32_1 = arith.constant 0 : i32
    return %c0_i32, %c0_i32_0 : i32, i32
  }
  func.func @transform_2(%arg0: i32) -> (i32, i32) {
    %c0_i32 = arith.constant 0 : i32
    %c0_i32_0 = arith.constant 0 : i32
    %c0_i32_1 = arith.constant 0 : i32
    return %c0_i32, %c0_i32_0 : i32, i32
  }
  func.func @transform_3(%arg0: i32) -> (i32, i32) {
    %c0_i32 = arith.constant 0 : i32
    %c0_i32_0 = arith.constant 0 : i32
    return %arg0, %c0_i32 : i32, i32
  }
}

</mosaic_0001>

<bundles_post_ra>
// kernel: patch_embed_forward.2
= control target key start
LH: loop header
LB: loop body
LE: loop exit
PB: predicated region body
PF: predicated region fallthrough
CT: control target
= control target key end

     0   :  { %s458_s0 = inlined_call_operand.vmem [shape: bf16[128,128], index: 0, kind: input, shape index: {}]   ;;  %s459_s1 = inlined_call_operand.vmem [shape: f32[1,128], index: 1, kind: input, shape index: {}]   ;;  %s460_s2 = inlined_call_operand.vmem [shape: bf16[32,64], index: 2, kind: input, shape index: {}]   ;;  %s461_s3 = inlined_call_operand.<no memory space> [shape: bf16[], index: 3, kind: input, shape index: {}]   ;;  %s462_s4 = inlined_call_operand.hbm [shape: bf16[32,128], index: 4, kind: output, shape index: {}]  }
   0x1   :  { %v9_v0 = vstv %s461_s3 }
   0x2   :  { %v10_v1 = vunpack.i.l.bf16 %v9_v0 }
   0x3   :  { %v347_v2 = vld [vmem:[%s458_s0] sm:$0xff]   ;;  %v33_v3 = vlaneseq  ;;  %v348_v4 = vld [vmem:[%s458_s0 + $0x8] sm:$0xff]   ;;  %v349_v5 = vld [vmem:[%s458_s0 + $0x10] sm:$0xff]  }
   0x4   :  { %323 = vmatprep.subr.bf16.mxu0 %v347_v2  ;;  %v350_v7 = vld [vmem:[%s458_s0 + $0x18] sm:$0xff]   ;;  %v30_v8 = vld [vmem:[%s460_s2] sm:$0xff]   ;;  %v281_v9 = vld [vmem:[%s460_s2 + $0x8] sm:$0xff]  }
   0x5   :  { %324 = vmatpush3.bf16.msra.mxu0 %v347_v2  ;;  %v34_v6 = vand.u32 127, %v33_v3 }
   0x6   :  { %325 = vmatprep.subr.bf16.mxu0 %v348_v4 }
   0x7   :  { %vm36_vm0 = vcmp.lt.s32.totalorder %v34_v6, 64 }
   0x9   :  { %326 = vmatpush3.bf16.msra.mxu0 %v348_v4 }
   0xa   :  { %327 = vmatprep.subr.bf16.mxu0 %v349_v5 }
   0xb   :  { %14 = vsyncpa [#allocation8], 0  ;;  %v31_v10 = vunpack.c.l.bf16 %v30_v8  ;;  %v52_v11 = vunpack.c.h.bf16 %v30_v8  ;;  %v74_v12 = vunpack.c.l.bf16 %v281_v9  ;;  %v96_v13 = vunpack.c.h.bf16 %v281_v9  ;;  %v351_v18 = vld [vmem:[%s458_s0 + $0x20] sm:$0xff]   ;;  %v352_v24 = vld [vmem:[%s458_s0 + $0x28] sm:$0xff]   ;;  %s382_s11 = smov [#allocation7]  }
   0xc   :  { %v381_v19 = vmov 0.0   ;;  %v353_v25 = vld [vmem:[%s458_s0 + $0x30] sm:$0xff]   ;;  %v354_v27 = vld [vmem:[%s458_s0 + $0x38] sm:$0xff]   ;;  %v283_v30 = vld [vmem:[%s459_s1] ss:$0 sm:$0xff]  ;;  %s269_s12 = sshll.u32 %s382_s11, 4  ;;  %s270_s12 = int_to_ptr.vmem [resolvable:$true] %s269_s12 }
   0xd   :  { %328 = vmatpush3.bf16.msra.mxu0 %v349_v5  ;;  %v37_v14 = vsel %vm36_vm0, %v31_v10, %v10_v1  ;;  %v58_v15 = vsel %vm36_vm0, %v52_v11, %v10_v1  ;;  %v80_v16 = vsel %vm36_vm0, %v74_v12, %v10_v1  ;;  %v102_v17 = vsel %vm36_vm0, %v96_v13, %v10_v1  ;;  %s357_s0 = scalar_lea.vmem %s270_s12, 256  ;;  %p362_p1 = scmp.lt.s32.totalorder %s270_s12, %s270_s12 }
   0xe   :  { %329 = vmatprep.subr.bf16.mxu0 %v350_v7  ;;  %v38_v20 = vpack.c.bf16 %v381_v19, %v37_v14  ;;  %v60_v21 = vpack.c.bf16 %v381_v19, %v58_v15  ;;  %v82_v22 = vpack.c.bf16 %v381_v19, %v80_v16  ;;  %v104_v23 = vpack.c.bf16 %v381_v19, %v102_v17  ;;  %p358_p0 = scmp.ne.s32.totalorder %s270_s12, %s357_s0  ;;  %p363_p2 = scmp.lt.s32.totalorder %s357_s0, %s357_s0 }
  0x10   :  { %40 = vst [vmem:[#allocation9] sm:$0xf] %v38_v20  ;;  %62 = vst [vmem:[#allocation9 + $0x4] sm:$0xf] %v60_v21  ;;  %p364_p3 = por %p363_p2, %p362_p1 }
  0x11   :  { %84 = vst [vmem:[#allocation9 + $0x8] sm:$0xf] %v82_v22  ;;  %106 = vst [vmem:[#allocation9 + $0xc] sm:$0xf] %v104_v23  ;;  %330 = vmatpush3.bf16.msra.mxu0 %v350_v7 }
  0x12   :  { %331 = vmatprep.subr.bf16.mxu0 %v351_v18  ;;  %p365_p4 = pnand %p364_p3, %p358_p0 }
  0x15   :  { %332 = vmatpush3.bf16.msra.mxu0 %v351_v18 }
  0x16   :  { %333 = vmatprep.subr.bf16.mxu0 %v352_v24 }
  0x17   :  { %v355_v26 = vld [vmem:[#allocation9] sm:$0xff]  }
  0x18   :  { %339 = vmatprep.mubr.bf16.mxu0 %v355_v26  ;;  %v356_v28 = vld [vmem:[#allocation9 + $0x8] sm:$0xff]  }
  0x19   :  { %334 = vmatpush3.bf16.msra.mxu0 %v352_v24 }
  0x1a   :  { %335 = vmatprep.subr.bf16.mxu0 %v353_v25 }
  0x1d   :  { %336 = vmatpush3.bf16.msra.mxu0 %v353_v25 }
  0x1e   :  { %337 = vmatprep.subr.bf16.mxu0 %v354_v27 }
  0x21   :  { %338 = vmatpush3.bf16.msra.mxu0 %v354_v27 }
  0x24   :  { %340 = vmatmul.mubr.bf16.vlgmr.msra.gmra.mrb[0].mxu0 %v356_v28 }
  0xf7   :  { %v341_v29 = vpop.f32.mrb[0].mxu0 }
  0xf8   :  { %v229_v31 = vpop.f32.mrb[1].mxu0  ;;  %v238_v33 = vadd.f32 %v341_v29, %v283_v30 }
  0xf9   :  { %v342_v32 = vpop.f32.mrb[2].mxu0  ;;  %v230_v36 = vadd.f32 %v283_v30, %v229_v31 }
  0xfa   :  { %v241_v34 = vadd.f32 %v342_v32, %v283_v30  ;;  %v232_v35 = vpop.f32.mrb[3].mxu0 }
  0xfb   :  { %v233_v37 = vadd.f32 %v283_v30, %v232_v35 }
  0xfc   :  { %v310_v38 = vpack.c.bf16 %v241_v34, %v238_v33 }
  0xfd   :  { %v305_v39 = vpack.c.bf16 %v233_v37, %v230_v36 }
  0xfe   :  { %312 = vst [vmem:[#allocation7 + $0x8] sm:$0xff] %v310_v38  }
  0xff   :  { %306 = vst [vmem:[#allocation7] sm:$0xff] %v305_v39  }
 0x100   :  { %368 = shalt.err (!%p365_p4)
}
 0x101   :  { %s369_s14 = scalar_lea.hbm %s462_s4, 256 }
 0x102   :  { %p370_p5 = scmp.ne.s32.totalorder %s462_s4, %s369_s14  ;;  %p373_p6 = scmp.lt.u32.totalorder %s369_s14, %s462_s4 }
 0x104   :  { %p375_p7 = pnand %p373_p6, %p370_p5 }
 0x106   :  { %378 = shalt.err (!%p375_p7)
}
 0x107   :  { %s383_s19 = smov 64   ;;  %s384_s20 = smov 4  }
 0x108   :  { %275 = dma.vmem_to_hbm [thread:$0]  %s270_s12, 256, %s462_s4, [#allocation8], %s383_s19, %s383_s19, %s384_s20  }
 0x109   :  { %379 = dma.done.wait [#allocation8], 256  }
 0x10a   :  { %380 = vsyncadd [#allocation8], 4294967040 }
 0x10b   :  { %279 = vsyncpa [#allocation8], 1 }

</bundles_post_ra>
